<compile_context>
chip_gen: v7x
topology: tpu7x:2x2x1
jax: 0.10.0
libtpu: 0.0.40
codegen_flags: <defaults>
</compile_context>

<pallas_src>
import jax
import jax.numpy as jnp
from jax.experimental import pallas as pl
from jax.experimental.pallas import tpu as pltpu

EPS = 1e-10

# Target bytes for ONE input tile (double-buffered in + out => ~4x this in VMEM).
_TARGET_TILE_BYTES = 16 * 1024 * 1024
# Headroom left for compiler-internal scratch below physical VMEM.
_VMEM_HEADROOM_BYTES = 16 * 1024 * 1024


def _make_l2norm_kernel(use_mxu_reduce: bool):
    def _l2norm_kernel(x_ref, o_ref):
        # x_ref: (bm, D) tile in VMEM; per-row reduction along the lane axis.
        # Upcast to f32 for the whole square/scale path: free under the HBM
        # roofline and matches the f32 reference for bf16/fp8 inputs.
        x = x_ref[...].astype(jnp.float32)
        xsq = x * x
        if use_mxu_reduce:
            # Tall-skinny MXU matmul reduction; keeps the XLU free (v7x).
            ones = jnp.ones((x.shape[1], 1), jnp.float32)
            sumsq = jnp.dot(xsq, ones, preferred_element_type=jnp.float32)
        else:
            sumsq = jnp.sum(xsq, axis=1, keepdims=True)
        inv = jax.lax.rsqrt(sumsq + EPS)  # EUP, not VPU divide
        o_ref[...] = (x * inv).astype(o_ref.dtype)

    return _l2norm_kernel


def _min_sublanes(dtype) -> int:
    itemsize = jnp.dtype(dtype).itemsize
    if itemsize >= 4:
        return 8      # f32
    if itemsize == 2:
        return 16     # bf16
    return 32         # int8 / fp8


def _vmem_budget_bytes() -> int:
    """Generation-aware VMEM budget: physical capacity minus headroom."""
    cap = None
    try:
        info = pltpu.get_tpu_info()
        cap = getattr(info, "vmem_capacity_bytes", None)
    except Exception:
        cap = None
    if not cap:
        cap = 64 << 20  # conservative fallback (v7x-sized)
    return max(16 << 20, int(cap) - _VMEM_HEADROOM_BYTES)


def _choose_block_rows(n: int, d: int, dtype, budget_bytes: int) -> int:
    """Row tile sized by a byte target (amortize per-step overhead), rounded to
    the sublane multiple, clamped so the grid keeps >= 2 steps when possible."""
    itemsize = jnp.dtype(dtype).itemsize
    min_rows = _min_sublanes(dtype)
    n_padded = -(-n // min_rows) * min_rows

    row_bytes = d * itemsize
    # One input tile target: ~16 MiB, but never more than budget/4
    # (double-buffered input + output tiles must fit the budget).
    target_tile_bytes = min(_TARGET_TILE_BYTES, budget_bytes // 4)
    target_tile_bytes = max(target_tile_bytes, min_rows * row_bytes)

    block = target_tile_bytes // row_bytes
    block = max(min_rows, (block // min_rows) * min_rows)

    # Keep at least 2 grid steps when there is enough work: the "parallel"
    # grid axis is what shards across the 2 TensorCores on v7x.
    if n_padded > min_rows:
        half_rows = -(-(-(-n // 2)) // min_rows) * min_rows  # ceil(ceil(n/2)/min)*min
        block = min(block, max(min_rows, half_rows))

    # Don't make the tile taller than (sublane-padded) N.
    return min(block, max(min_rows, n_padded))


def l2norm(x: jax.Array, *, block_rows: int | None = None) -> jax.Array:
    """Row-wise L2 normalization: out[i, :] = x[i, :] * rsqrt(sum(x[i]^2) + eps)."""
    n, d = x.shape
    itemsize = jnp.dtype(x.dtype).itemsize
    budget = _vmem_budget_bytes()
    if block_rows is None:
        block_rows = _choose_block_rows(n, d, x.dtype, budget)
    # TODO(synk): if D ever grows so large that even a min-height tile exceeds
    # the VMEM budget, add a second "arbitrary" grid axis over D with a
    # two-pass (sum-of-squares, then normalize) structure. Current design
    # assumes a full row fits in one VMEM tile.
    # TODO(synk): if production feature dims are not multiples of 128, pad D
    # upstream (zeros don't change the sum of squares) so the out_spec stays
    # lane-dense; padding here would add an extra HBM pass and negate the win.

    grid = (pl.cdiv(n, block_rows),)

    tile_bytes = block_rows * d * itemsize
    # Double-buffered in + out, plus ~2 MiB slack; never exceed the
    # generation-aware budget (keeps headroom below physical VMEM on v7x).
    vmem_limit = int(min(max(4 * tile_bytes + (2 << 20), 16 << 20), budget))

    cost = pl.CostEstimate(
        flops=3 * n * d,               # square, reduce-add, scale
        transcendentals=n,             # one rsqrt per row
        bytes_accessed=2 * n * d * itemsize,
    )

    kernel = _make_l2norm_kernel(use_mxu_reduce=(d % 128 == 0))

    return pl.pallas_call(
        kernel,
        out_shape=jax.ShapeDtypeStruct((n, d), x.dtype),
        grid_spec=pltpu.PrefetchScalarGridSpec(
            num_scalar_prefetch=0,
            grid=grid,
            in_specs=[pl.BlockSpec((block_rows, d), lambda i: (i, 0))],
            out_specs=pl.BlockSpec((block_rows, d), lambda i: (i, 0)),
        ),
        compiler_params=pltpu.CompilerParams(
            dimension_semantics=("parallel",),
            vmem_limit_bytes=vmem_limit,
        ),
        cost_estimate=cost,
    )(x)


def _reference(x):
    norm = jnp.sqrt(jnp.sum(x.astype(jnp.float32) ** 2, axis=1, keepdims=True) + EPS)
    return (x.astype(jnp.float32) / norm).astype(x.dtype)


if __name__ == "__main__":
    key = jax.random.PRNGKey(0)

    # Small shape consistent with the module: batch of 8 descriptors, dim 128.
    x = jax.random.normal(key, (8, 128), dtype=jnp.float32)
    out = jax.block_until_ready(l2norm(x))
    assert out.shape == x.shape and out.dtype == x.dtype
    assert jnp.allclose(out, _reference(x), atol=1e-6, rtol=1e-5)

    # Partial last block + non-128 feature dim (exercises the jnp.sum path).
    x2 = jax.random.normal(jax.random.PRNGKey(0), (20, 96), dtype=jnp.float32)
    out2 = jax.block_until_ready(l2norm(x2))
    assert out2.shape == x2.shape and out2.dtype == x2.dtype
    assert jnp.allclose(out2, _reference(x2), atol=1e-6, rtol=1e-5)

    # bf16 path (16-sublane tiles, f32 compute inside the kernel).
    x3 = jax.random.normal(jax.random.PRNGKey(0), (16, 128), dtype=jnp.bfloat16)
    out3 = jax.block_until_ready(l2norm(x3))
    assert out3.shape == x3.shape and out3.dtype == x3.dtype
    assert jnp.allclose(out3.astype(jnp.float32),
                        _reference(x3).astype(jnp.float32), atol=2e-2, rtol=2e-2)

    print("KERNEL_OK")
</pallas_src>

<mosaic_0001>
module attributes {stable_mosaic.version = 11 : i64} {
  func.func @_l2norm_kernel(%arg0: i32, %arg1: memref<8x128xf32, #tpu.memory_space<vmem>>, %arg2: memref<8x128xf32, #tpu.memory_space<vmem>>) attributes {dimension_semantics = [#tpu.dimension_semantics<parallel>], iteration_bounds = array<i64: 1>, scalar_prefetch = 0 : i64, scratch_operands = 0 : i64, tpu.core_type = #tpu.core_type<tc>, window_params = [{transform_indices = @transform_0, window_bounds = array<i64: 8, 128>}, {transform_indices = @transform_1, window_bounds = array<i64: 8, 128>}]} {
    %c0 = arith.constant 0 : index
    %c0_0 = arith.constant 0 : index
    %0 = vector.load %arg1[%c0, %c0_0] : memref<8x128xf32, #tpu.memory_space<vmem>>, vector<8x128xf32>
    %1 = arith.mulf %0, %0 : vector<8x128xf32>
    %cst = arith.constant 1.000000e+00 : f32
    %2 = vector.broadcast %cst : f32 to vector<128x1xf32>
    %cst_1 = arith.constant dense<0.000000e+00> : vector<8x1xf32>
    %3 = tpu.matmul %1, %2, %cst_1 {dimension_numbers = #tpu.dot_dimension_numbers<[1], [0], [0], [1], [0, 0, 1, 1], [], []>} : vector<8x128xf32>, vector<128x1xf32>, vector<8x1xf32> -> vector<8x1xf32>
    %cst_2 = arith.constant 1.000000e-10 : f32
    %4 = vector.broadcast %cst_2 : f32 to vector<8x1xf32>
    %5 = arith.addf %3, %4 : vector<8x1xf32>
    %6 = math.rsqrt %5 : vector<8x1xf32>
    %7 = vector.broadcast %6 : vector<8x1xf32> to vector<8x128xf32>
    %8 = arith.mulf %0, %7 : vector<8x128xf32>
    %c0_3 = arith.constant 0 : index
    %c0_4 = arith.constant 0 : index
    %9 = vector.load %arg2[%c0_3, %c0_4] : memref<8x128xf32, #tpu.memory_space<vmem>>, vector<8x128xf32>
    tpu.vector_store %arg2[%c0_3, %c0_4], %8 {strides = array<i32>} : memref<8x128xf32, #tpu.memory_space<vmem>>, vector<8x128xf32>,
    return
  }
  func.func @transform_0(%arg0: i32) -> (i32, i32) {
    %c0_i32 = arith.constant 0 : i32
    %c0_i32_0 = arith.constant 0 : i32
    return %arg0, %c0_i32 : i32, i32
  }
  func.func @transform_1(%arg0: i32) -> (i32, i32) {
    %c0_i32 = arith.constant 0 : i32
    %c0_i32_0 = arith.constant 0 : i32
    return %arg0, %c0_i32 : i32, i32
  }
}

</mosaic_0001>

<bundles_post_ra>
// kernel: tpu_custom_call.1
= control target key start
LH: loop header
LB: loop body
LE: loop exit
PB: predicated region body
PF: predicated region fallthrough
CT: control target
= control target key end

     0   :  { %6 = vsyncpa [#allocation3], 0  ;;  %s283_s0 = inlined_call_operand.hbm [shape: f32[8,128], index: 0, kind: input, shape index: {}]   ;;  %s284_s1 = inlined_call_operand.hbm [shape: f32[8,128], index: 1, kind: output, shape index: {}]  }
   0x1   :  { %7 = vsyncpa [#allocation4], 0  ;;  %s242_s6 = smov [#allocation2]   ;;  %s194_s10 = scalar_lea.hbm %s283_s0, 128 }
   0x2   :  { %s14_s7 = sshll.u32 %s242_s6, 4  ;;  %p195_p0 = scmp.ne.s32.totalorder %s283_s0, %s194_s10  ;;  %s15_s7 = int_to_ptr.vmem [resolvable:$true] %s14_s7 }
   0x3   :  { %p198_p1 = scmp.lt.u32.totalorder %s194_s10, %s283_s0 }
   0x5   :  { %p200_p2 = pnand %p198_p1, %p195_p0 }
   0x7   :  { %203 = shalt.err (!%p200_p2)
}
   0x8   :  { %s204_s15 = scalar_lea.vmem %s15_s7, 128  ;;  %p209_p4 = scmp.lt.s32.totalorder %s15_s7, %s15_s7 }
   0x9   :  { %p205_p3 = scmp.ne.s32.totalorder %s15_s7, %s204_s15  ;;  %p210_p5 = scmp.lt.s32.totalorder %s204_s15, %s204_s15 }
   0xb   :  { %p211_p6 = por %p210_p5, %p209_p4 }
   0xd   :  { %p212_p7 = pnand %p211_p6, %p205_p3 }
   0xf   :  { %215 = shalt.err (!%p212_p7)
}
  0x10   :  { %17 = dma.hbm_to_vmem [thread:$0]  %s283_s0, 128, %s15_s7, [#allocation3]  }
  0x11   :  { %238 = dma.done.wait [#allocation3], 128  }
  0x12   :  { %239 = vsyncadd [#allocation3], 4294967168  ;;  %v243_v0 = vmov 0.0|0.0   ;;  %v244_v1 = vmov 1.0|1.0   ;;  %vm245_vm0 = vmmov 0  }
  0x13   :  { %168 = vmatprep.subr.bf16.mxu0 %v243_v0  ;;  %v246_v2 = vmov 0.0   ;;  %v21_v3 = vld [vmem:[#allocation2] sm:$0xff]  ;;  %v247_v5 = vmov 0   ;;  %s248_s0 = smov [#allocation5]  }
  0x14   :  { %169 = vmatpush3.bf16.msra.mxu0 %v244_v1  ;;  %165 = vmatprep.mubr.msk.f32.mxu0 %vm245_vm0, %v246_v2  ;;  %v22_v4 = vmul.f32 %v21_v3, %v21_v3  ;;  %s107_s18 = sshll.u32 %s248_s0, 4  ;;  %s108_s18 = int_to_ptr.vmem [resolvable:$true] %s107_s18 }
  0x15   :  { %170 = vmatprep.subr.bf16.mxu0 %v243_v0  ;;  %191 = vset.pattern.permute.xlu0 %v247_v5  ;;  %s216_s19 = scalar_lea.vmem %s108_s18, 128  ;;  %p221_p9 = scmp.lt.s32.totalorder %s108_s18, %s108_s18 }
  0x16   :  { %p217_p8 = scmp.ne.s32.totalorder %s108_s18, %s216_s19  ;;  %p222_p10 = scmp.lt.s32.totalorder %s216_s19, %s216_s19 }
  0x18   :  { %171 = vmatpush3.bf16.msra.mxu0 %v244_v1  ;;  %p223_p11 = por %p222_p10, %p221_p9 }
  0x19   :  { %172 = vmatprep.subr.bf16.mxu0 %v243_v0 }
  0x1a   :  { %p224_p12 = pnand %p223_p11, %p217_p8 }
  0x1c   :  { %173 = vmatpush3.bf16.msra.mxu0 %v244_v1 }
  0x1d   :  { %174 = vmatprep.subr.bf16.mxu0 %v243_v0 }
  0x20   :  { %175 = vmatpush3.bf16.msra.mxu0 %v244_v1 }
  0x21   :  { %176 = vmatprep.subr.bf16.mxu0 %v243_v0 }
  0x24   :  { %177 = vmatpush3.bf16.msra.mxu0 %v244_v1 }
  0x25   :  { %178 = vmatprep.subr.bf16.mxu0 %v243_v0 }
  0x28   :  { %179 = vmatpush3.bf16.msra.mxu0 %v244_v1 }
  0x29   :  { %180 = vmatprep.subr.bf16.mxu0 %v243_v0 }
  0x2c   :  { %181 = vmatpush3.bf16.msra.mxu0 %v244_v1 }
  0x2d   :  { %182 = vmatprep.subr.bf16.mxu0 %v243_v0 }
  0x30   :  { %183 = vmatpush3.bf16.msra.mxu0 %v244_v1 }
  0x33   :  { %166 = vmatmul.mubr.f32.vlgmr.msra.gmra.mrb[0].mxu0 %v22_v4 }
 0x106   :  { %v89_v6 = vpop.f32.mrb[0].mxu0 }
 0x107   :  { %v90_v7 = vadd.f32 1e-10, %v89_v6  ;;  %v167_v8 = vpop.f32.mrb[1].mxu0 }
 0x109   :  { %192 = vrsqrt.f32 %v90_v7 }
 0x113   :  { %v193_v9 = vpop.eup %192 }
 0x114   :  { %96 = vperm.xlu0 %191, %v193_v9  }
 0x193   :  { %v97_v10 = vpop.permute.xlu0 %96 }
 0x194   :  { %v99_v11 = vmul.f32 %v97_v10, %v21_v3 }
 0x196   :  { %100 = vst [vmem:[#allocation5] sm:$0xff] %v99_v11 }
 0x197   :  { %227 = shalt.err (!%p224_p12)
}
 0x198   :  { %s228_s22 = scalar_lea.hbm %s284_s1, 128 }
 0x199   :  { %p229_p13 = scmp.ne.s32.totalorder %s284_s1, %s228_s22  ;;  %p232_p0 = scmp.lt.u32.totalorder %s228_s22, %s284_s1 }
 0x19b   :  { %p234_p1 = pnand %p232_p0, %p229_p13 }
 0x19d   :  { %237 = shalt.err (!%p234_p1)
}
 0x19e   :  { %110 = dma.vmem_to_hbm [thread:$0]  %s108_s18, 128, %s284_s1, [#allocation4]  }
 0x19f   :  { %240 = dma.done.wait [#allocation4], 128  }
 0x1a0   :  { %241 = vsyncadd [#allocation4], 4294967168 }
 0x1a1   :  { %114 = vsyncpa [#allocation3], 1 }
 0x1a2   :  { %115 = vsyncpa [#allocation4], 1 }

</bundles_post_ra>
